<compile_context>
chip_gen: v7x
topology: tpu7x:2x2x1
jax: 0.10.0
libtpu: 0.0.40
codegen_flags: <defaults>
</compile_context>

<pallas_src>
import functools

import jax
import jax.numpy as jnp
from jax import lax
from jax.experimental import pallas as pl
from jax.experimental.pallas import tpu as pltpu


HIDDEN = 20
PRED_STEPS = 1

_UNROLL_MAX_T = 64      # fully-unroll threshold for the single-shot kernel
_STREAM_T_BLK = 256     # default time block for the long-T streaming kernel


# --------------------------------------------------------------------------- #
# Kernel 1: small / moderate T — single invocation, fully unrolled time loop. #
# --------------------------------------------------------------------------- #
def _rnn_fused_kernel(x_ref,        # (B, T)  raw input (input_size==1 squeezed)
                      w_row_ref,    # (1, H)  W_ih^T row (single input channel)
                      bias_ref,     # (1, H)  b_ih + b_hh (pre-summed)
                      w_hh_t_ref,   # (H, H)  W_hh^T
                      w_fc_t_ref,   # (H, P)  W_fc^T
                      b_fc_ref,     # (1, P)  fc bias
                      y_ref):       # (B, P)  output
    T = x_ref.shape[1]

    x = x_ref[...]                                   # (B, T)
    w_row = w_row_ref[...]                           # (1, H)
    bias = bias_ref[...]                             # (1, H)
    w_hh_t = w_hh_t_ref[...]                         # hoisted out of the loop

    def pre(t):
        # In-kernel input projection: a VPU broadcast mul+add that lands on
        # VALU slots idle under the MXU/tanh latency chain (i.e. free).
        return x[:, t:t + 1] * w_row + bias          # (B,1)*(1,H)+(1,H) -> (B,H)

    # h0 = 0 (PyTorch default)  =>  h1 = tanh(pre(0)); skips the zero matmul.
    h = jnp.tanh(pre(0))
    for t in range(1, T):
        # Default single-pass MXU precision on purpose: per-step matmul
        # latency is multiplied by T on the serial critical path.
        h = jnp.tanh(pre(t) + jnp.dot(h, w_hh_t,
                                      preferred_element_type=jnp.float32))

    # fc(out[:, -1]) == fc(h_T), fused into the same kernel.
    y_ref[...] = (jnp.dot(h, w_fc_t_ref[...],
                          preferred_element_type=jnp.float32)
                  + b_fc_ref[...])


# --------------------------------------------------------------------------- #
# Kernel 2: long T — 1-D grid over time blocks, h carried in VMEM scratch.    #
# --------------------------------------------------------------------------- #
def _rnn_stream_kernel(x_ref,       # (T_BLK, B) time-major block of raw input
                       w_row_ref,   # (1, H)
                       bias_ref,    # (1, H)
                       w_hh_t_ref,  # (H, H)
                       w_fc_t_ref,  # (H, P)
                       b_fc_ref,    # (1, P)
                       y_ref,       # (B, P)
                       h_scr,       # (B, H)         carried hidden state
                       pre_scr,     # (T_BLK, B, H)  per-block input projection
                       *, seq_len, t_blk):
    pid = pl.program_id(0)

    @pl.when(pid == 0)
    def _init():
        h_scr[...] = jnp.zeros_like(h_scr)

    w_hh_t = w_hh_t_ref[...]

    # Block-wide input projection (time-parallel, VPU).  The next block's x
    # DMA is fully hidden behind the serial recurrence of this block.
    pre_scr[...] = (x_ref[...][:, :, None] * w_row_ref[...][None, :, :]
                    + bias_ref[...][None, :, :])

    # Last block may be partial; tail padding is never executed.
    n_valid = jnp.minimum(t_blk, seq_len - pid * t_blk)

    def step(t, h):
        return jnp.tanh(pre_scr[t]                    # (B, H) dynamic row load
                        + jnp.dot(h, w_hh_t,
                                  preferred_element_type=jnp.float32))

    h_scr[...] = lax.fori_loop(0, n_valid, step, h_scr[...])

    @pl.when(pid == pl.num_programs(0) - 1)
    def _finalize():
        y_ref[...] = (jnp.dot(h_scr[...], w_fc_t_ref[...],
                              preferred_element_type=jnp.float32)
                      + b_fc_ref[...])


# --------------------------------------------------------------------------- #
# Wrappers                                                                     #
# --------------------------------------------------------------------------- #
def _prep_operands(x, params):
    w_ih, w_hh, b_ih, b_hh, w_fc, b_fc = params
    B, T, I = x.shape
    H = w_hh.shape[0]
    P = w_fc.shape[0]
    if I != 1:
        # TODO(synk): input_size > 1 would use an in-kernel dot for the input
        # projection; the reference PyTorch module fixes input_size=1.
        raise NotImplementedError("input_size must be 1, as in the PyTorch module")
    x2 = x[..., 0].astype(jnp.float32)                       # (B, T): no `pre` in HBM
    w_row = w_ih[:, 0].reshape(1, H).astype(jnp.float32)     # (1, H)
    bias = (b_ih + b_hh).reshape(1, H).astype(jnp.float32)   # (1, H)
    w_hh_t = w_hh.T.astype(jnp.float32)                      # (H, H)
    w_fc_t = w_fc.T.astype(jnp.float32)                      # (H, P)
    b_fc2 = b_fc.reshape(1, P).astype(jnp.float32)           # (1, P)
    return x2, w_row, bias, w_hh_t, w_fc_t, b_fc2, (B, T, H, P)


@jax.jit
def rnn_forward_unrolled(x, params):
    """Single un-gridded kernel, fully unrolled time loop (small / moderate T)."""
    x2, w_row, bias, w_hh_t, w_fc_t, b_fc2, (B, T, H, P) = _prep_operands(x, params)
    vmem = pl.BlockSpec(memory_space=pltpu.MemorySpace.VMEM)
    return pl.pallas_call(
        _rnn_fused_kernel,
        out_shape=jax.ShapeDtypeStruct((B, P), jnp.float32),
        in_specs=[vmem] * 6,
        out_specs=vmem,
    )(x2, w_row, bias, w_hh_t, w_fc_t, b_fc2)


@functools.partial(jax.jit, static_argnames=("t_blk",))
def rnn_forward_streamed(x, params, t_blk=_STREAM_T_BLK):
    """Long-T path: stream x over a 1-D time-block grid, carry h in VMEM."""
    x2, w_row, bias, w_hh_t, w_fc_t, b_fc2, (B, T, H, P) = _prep_operands(x, params)
    assert t_blk % 8 == 0, "time block must be a multiple of the f32 sublane count"
    n_blk = pl.cdiv(T, t_blk)
    t_pad = n_blk * t_blk

    # Time-major (T_pad, B) so each grid step DMAs one dense block of raw x.
    x_tm = jnp.transpose(x2)                                  # (T, B)
    if t_pad != T:
        x_tm = jnp.pad(x_tm, ((0, t_pad - T), (0, 0)))

    kernel = functools.partial(_rnn_stream_kernel, seq_len=T, t_blk=t_blk)
    grid_spec = pltpu.PrefetchScalarGridSpec(
        num_scalar_prefetch=0,
        grid=(n_blk,),
        in_specs=[
            pl.BlockSpec((t_blk, B), lambda i: (i, 0)),       # streamed x blocks
            pl.BlockSpec((1, H), lambda i: (0, 0)),
            pl.BlockSpec((1, H), lambda i: (0, 0)),
            pl.BlockSpec((H, H), lambda i: (0, 0)),
            pl.BlockSpec((H, P), lambda i: (0, 0)),
            pl.BlockSpec((1, P), lambda i: (0, 0)),
        ],
        out_specs=pl.BlockSpec((B, P), lambda i: (0, 0)),     # resident output
        scratch_shapes=[
            pltpu.VMEM((B, H), jnp.float32),                  # carried hidden state
            pltpu.VMEM((t_blk, B, H), jnp.float32),           # per-block projection
        ],
    )
    return pl.pallas_call(
        kernel,
        out_shape=jax.ShapeDtypeStruct((B, P), jnp.float32),
        grid_spec=grid_spec,
        compiler_params=pltpu.CompilerParams(
            dimension_semantics=("arbitrary",)),              # serial over time
    )(x_tm, w_row, bias, w_hh_t, w_fc_t, b_fc2)


def rnn_forward(x, params):
    """Forward pass matching the PyTorch module: fc(rnn(x)[0][:, -1])."""
    T = x.shape[1]
    if T <= _UNROLL_MAX_T:
        return rnn_forward_unrolled(x, params)
    return rnn_forward_streamed(x, params)


# --------------------------------------------------------------------------- #
# Parameters and pure-JAX reference                                            #
# --------------------------------------------------------------------------- #
def init_params(key, hidden=HIDDEN, pred_steps=PRED_STEPS):
    """Deterministic synthetic parameters matching the PyTorch shapes."""
    ks = jax.random.split(key, 6)
    s = 1.0 / jnp.sqrt(jnp.float32(hidden))
    w_ih = jax.random.uniform(ks[0], (hidden, 1), jnp.float32, -s, s)           # weight_ih_l0
    w_hh = jax.random.uniform(ks[1], (hidden, hidden), jnp.float32, -s, s)      # weight_hh_l0
    b_ih = jax.random.uniform(ks[2], (hidden,), jnp.float32, -s, s)             # bias_ih_l0
    b_hh = jax.random.uniform(ks[3], (hidden,), jnp.float32, -s, s)             # bias_hh_l0
    w_fc = jax.random.uniform(ks[4], (pred_steps, hidden), jnp.float32, -s, s)  # fc.weight
    b_fc = jax.random.uniform(ks[5], (pred_steps,), jnp.float32, -s, s)         # fc.bias
    return (w_ih, w_hh, b_ih, b_hh, w_fc, b_fc)


def rnn_forward_ref(x, params):
    """Pure-JAX reference matching torch semantics (for correctness checks)."""
    w_ih, w_hh, b_ih, b_hh, w_fc, b_fc = params
    B = x.shape[0]
    H = w_hh.shape[0]
    x_tm = jnp.transpose(x, (1, 0, 2))                        # (T, B, I)

    def step(h, xt):
        h = jnp.tanh(xt @ w_ih.T + b_ih + h @ w_hh.T + b_hh)
        return h, None

    h0 = jnp.zeros((B, H), jnp.float32)
    h_last, _ = lax.scan(step, h0, x_tm)
    return h_last @ w_fc.T + b_fc


# --------------------------------------------------------------------------- #
# Self-test                                                                    #
# --------------------------------------------------------------------------- #
if __name__ == "__main__":
    key = jax.random.PRNGKey(0)
    k_param, k_x8, k_xlong = jax.random.split(key, 3)
    params = init_params(k_param)

    # --- benchmark shape: batch=2, seq=8, input=1 (like the PyTorch module) --
    B, T = 2, 8
    x8 = jax.random.normal(k_x8, (B, T, 1), jnp.float32)
    y8 = rnn_forward(x8, params)
    jax.block_until_ready(y8)
    assert y8.shape == (B, PRED_STEPS)

    with jax.default_matmul_precision("highest"):
        y8_ref = rnn_forward_ref(x8, params)
    assert jnp.allclose(y8, y8_ref, atol=1e-4, rtol=1e-4), (
        f"unrolled path: max abs err = {jnp.max(jnp.abs(y8 - y8_ref))}")

    # --- long-T streaming path: multi-block with a partial last block --------
    T_long = 100
    x_long = jax.random.normal(k_xlong, (B, T_long, 1), jnp.float32)
    y_stream = rnn_forward_streamed(x_long, params, t_blk=32)   # 4 blocks, last partial
    y_unroll = rnn_forward_unrolled(x_long, params)
    jax.block_until_ready((y_stream, y_unroll))

    # Identical in-kernel arithmetic => the two Pallas paths must agree tightly.
    assert jnp.allclose(y_stream, y_unroll, atol=1e-5, rtol=1e-5), (
        f"stream vs unrolled: max abs err = {jnp.max(jnp.abs(y_stream - y_unroll))}")

    # Loose sanity check vs the f32 reference (recurrent rounding drift over T).
    with jax.default_matmul_precision("highest"):
        y_long_ref = rnn_forward_ref(x_long, params)
    assert jnp.allclose(y_stream, y_long_ref, atol=5e-2, rtol=5e-2), (
        f"stream vs ref: max abs err = {jnp.max(jnp.abs(y_stream - y_long_ref))}")

    print("KERNEL_OK")
</pallas_src>

<mosaic_0001>
module attributes {stable_mosaic.version = 11 : i64} {
  func.func @_rnn_fused_kernel(%arg0: memref<2x8xf32, #tpu.memory_space<vmem>>, %arg1: memref<1x20xf32, #tpu.memory_space<vmem>>, %arg2: memref<1x20xf32, #tpu.memory_space<vmem>>, %arg3: memref<20x20xf32, #tpu.memory_space<vmem>>, %arg4: memref<20x1xf32, #tpu.memory_space<vmem>>, %arg5: memref<1x1xf32, #tpu.memory_space<vmem>>, %arg6: memref<2x1xf32, #tpu.memory_space<vmem>>) attributes {dimension_semantics = [], scalar_prefetch = 0 : i64, scratch_operands = 0 : i64, tpu.core_type = #tpu.core_type<tc>} {
    %c0 = arith.constant 0 : index
    %c0_0 = arith.constant 0 : index
    %0 = vector.load %arg0[%c0, %c0_0] : memref<2x8xf32, #tpu.memory_space<vmem>>, vector<2x8xf32>
    %c0_1 = arith.constant 0 : index
    %c0_2 = arith.constant 0 : index
    %1 = vector.load %arg1[%c0_1, %c0_2] : memref<1x20xf32, #tpu.memory_space<vmem>>, vector<1x20xf32>
    %c0_3 = arith.constant 0 : index
    %c0_4 = arith.constant 0 : index
    %2 = vector.load %arg2[%c0_3, %c0_4] : memref<1x20xf32, #tpu.memory_space<vmem>>, vector<1x20xf32>
    %c0_5 = arith.constant 0 : index
    %c0_6 = arith.constant 0 : index
    %3 = vector.load %arg3[%c0_5, %c0_6] : memref<20x20xf32, #tpu.memory_space<vmem>>, vector<20x20xf32>
    %4 = vector.extract_strided_slice %0 {offsets = [0, 0], sizes = [2, 1], strides = [1, 1]} : vector<2x8xf32> to vector<2x1xf32>
    %5 = vector.broadcast %4 : vector<2x1xf32> to vector<2x20xf32>
    %6 = vector.broadcast %1 : vector<1x20xf32> to vector<2x20xf32>
    %7 = arith.mulf %5, %6 : vector<2x20xf32>
    %8 = vector.broadcast %2 : vector<1x20xf32> to vector<2x20xf32>
    %9 = arith.addf %7, %8 : vector<2x20xf32>
    %10 = math.tanh %9 : vector<2x20xf32>
    %11 = vector.extract_strided_slice %0 {offsets = [0, 1], sizes = [2, 1], strides = [1, 1]} : vector<2x8xf32> to vector<2x1xf32>
    %12 = vector.broadcast %11 : vector<2x1xf32> to vector<2x20xf32>
    %13 = vector.broadcast %1 : vector<1x20xf32> to vector<2x20xf32>
    %14 = arith.mulf %12, %13 : vector<2x20xf32>
    %15 = vector.broadcast %2 : vector<1x20xf32> to vector<2x20xf32>
    %16 = arith.addf %14, %15 : vector<2x20xf32>
    %cst = arith.constant dense<0.000000e+00> : vector<2x20xf32>
    %17 = tpu.matmul %10, %3, %cst {dimension_numbers = #tpu.dot_dimension_numbers<[1], [0], [0], [1], [0, 0, 1, 1], [], []>} : vector<2x20xf32>, vector<20x20xf32>, vector<2x20xf32> -> vector<2x20xf32>
    %18 = arith.addf %16, %17 : vector<2x20xf32>
    %19 = math.tanh %18 : vector<2x20xf32>
    %20 = vector.extract_strided_slice %0 {offsets = [0, 2], sizes = [2, 1], strides = [1, 1]} : vector<2x8xf32> to vector<2x1xf32>
    %21 = vector.broadcast %20 : vector<2x1xf32> to vector<2x20xf32>
    %22 = vector.broadcast %1 : vector<1x20xf32> to vector<2x20xf32>
    %23 = arith.mulf %21, %22 : vector<2x20xf32>
    %24 = vector.broadcast %2 : vector<1x20xf32> to vector<2x20xf32>
    %25 = arith.addf %23, %24 : vector<2x20xf32>
    %cst_7 = arith.constant dense<0.000000e+00> : vector<2x20xf32>
    %26 = tpu.matmul %19, %3, %cst_7 {dimension_numbers = #tpu.dot_dimension_numbers<[1], [0], [0], [1], [0, 0, 1, 1], [], []>} : vector<2x20xf32>, vector<20x20xf32>, vector<2x20xf32> -> vector<2x20xf32>
    %27 = arith.addf %25, %26 : vector<2x20xf32>
    %28 = math.tanh %27 : vector<2x20xf32>
    %29 = vector.extract_strided_slice %0 {offsets = [0, 3], sizes = [2, 1], strides = [1, 1]} : vector<2x8xf32> to vector<2x1xf32>
    %30 = vector.broadcast %29 : vector<2x1xf32> to vector<2x20xf32>
    %31 = vector.broadcast %1 : vector<1x20xf32> to vector<2x20xf32>
    %32 = arith.mulf %30, %31 : vector<2x20xf32>
    %33 = vector.broadcast %2 : vector<1x20xf32> to vector<2x20xf32>
    %34 = arith.addf %32, %33 : vector<2x20xf32>
    %cst_8 = arith.constant dense<0.000000e+00> : vector<2x20xf32>
    %35 = tpu.matmul %28, %3, %cst_8 {dimension_numbers = #tpu.dot_dimension_numbers<[1], [0], [0], [1], [0, 0, 1, 1], [], []>} : vector<2x20xf32>, vector<20x20xf32>, vector<2x20xf32> -> vector<2x20xf32>
    %36 = arith.addf %34, %35 : vector<2x20xf32>
    %37 = math.tanh %36 : vector<2x20xf32>
    %38 = vector.extract_strided_slice %0 {offsets = [0, 4], sizes = [2, 1], strides = [1, 1]} : vector<2x8xf32> to vector<2x1xf32>
    %39 = vector.broadcast %38 : vector<2x1xf32> to vector<2x20xf32>
    %40 = vector.broadcast %1 : vector<1x20xf32> to vector<2x20xf32>
    %41 = arith.mulf %39, %40 : vector<2x20xf32>
    %42 = vector.broadcast %2 : vector<1x20xf32> to vector<2x20xf32>
    %43 = arith.addf %41, %42 : vector<2x20xf32>
    %cst_9 = arith.constant dense<0.000000e+00> : vector<2x20xf32>
    %44 = tpu.matmul %37, %3, %cst_9 {dimension_numbers = #tpu.dot_dimension_numbers<[1], [0], [0], [1], [0, 0, 1, 1], [], []>} : vector<2x20xf32>, vector<20x20xf32>, vector<2x20xf32> -> vector<2x20xf32>
    %45 = arith.addf %43, %44 : vector<2x20xf32>
    %46 = math.tanh %45 : vector<2x20xf32>
    %47 = vector.extract_strided_slice %0 {offsets = [0, 5], sizes = [2, 1], strides = [1, 1]} : vector<2x8xf32> to vector<2x1xf32>
    %48 = vector.broadcast %47 : vector<2x1xf32> to vector<2x20xf32>
    %49 = vector.broadcast %1 : vector<1x20xf32> to vector<2x20xf32>
    %50 = arith.mulf %48, %49 : vector<2x20xf32>
    %51 = vector.broadcast %2 : vector<1x20xf32> to vector<2x20xf32>
    %52 = arith.addf %50, %51 : vector<2x20xf32>
    %cst_10 = arith.constant dense<0.000000e+00> : vector<2x20xf32>
    %53 = tpu.matmul %46, %3, %cst_10 {dimension_numbers = #tpu.dot_dimension_numbers<[1], [0], [0], [1], [0, 0, 1, 1], [], []>} : vector<2x20xf32>, vector<20x20xf32>, vector<2x20xf32> -> vector<2x20xf32>
    %54 = arith.addf %52, %53 : vector<2x20xf32>
    %55 = math.tanh %54 : vector<2x20xf32>
    %56 = vector.extract_strided_slice %0 {offsets = [0, 6], sizes = [2, 1], strides = [1, 1]} : vector<2x8xf32> to vector<2x1xf32>
    %57 = vector.broadcast %56 : vector<2x1xf32> to vector<2x20xf32>
    %58 = vector.broadcast %1 : vector<1x20xf32> to vector<2x20xf32>
    %59 = arith.mulf %57, %58 : vector<2x20xf32>
    %60 = vector.broadcast %2 : vector<1x20xf32> to vector<2x20xf32>
    %61 = arith.addf %59, %60 : vector<2x20xf32>
    %cst_11 = arith.constant dense<0.000000e+00> : vector<2x20xf32>
    %62 = tpu.matmul %55, %3, %cst_11 {dimension_numbers = #tpu.dot_dimension_numbers<[1], [0], [0], [1], [0, 0, 1, 1], [], []>} : vector<2x20xf32>, vector<20x20xf32>, vector<2x20xf32> -> vector<2x20xf32>
    %63 = arith.addf %61, %62 : vector<2x20xf32>
    %64 = math.tanh %63 : vector<2x20xf32>
    %65 = vector.extract_strided_slice %0 {offsets = [0, 7], sizes = [2, 1], strides = [1, 1]} : vector<2x8xf32> to vector<2x1xf32>
    %66 = vector.broadcast %65 : vector<2x1xf32> to vector<2x20xf32>
    %67 = vector.broadcast %1 : vector<1x20xf32> to vector<2x20xf32>
    %68 = arith.mulf %66, %67 : vector<2x20xf32>
    %69 = vector.broadcast %2 : vector<1x20xf32> to vector<2x20xf32>
    %70 = arith.addf %68, %69 : vector<2x20xf32>
    %cst_12 = arith.constant dense<0.000000e+00> : vector<2x20xf32>
    %71 = tpu.matmul %64, %3, %cst_12 {dimension_numbers = #tpu.dot_dimension_numbers<[1], [0], [0], [1], [0, 0, 1, 1], [], []>} : vector<2x20xf32>, vector<20x20xf32>, vector<2x20xf32> -> vector<2x20xf32>
    %72 = arith.addf %70, %71 : vector<2x20xf32>
    %73 = math.tanh %72 : vector<2x20xf32>
    %c0_13 = arith.constant 0 : index
    %c0_14 = arith.constant 0 : index
    %74 = vector.load %arg4[%c0_13, %c0_14] : memref<20x1xf32, #tpu.memory_space<vmem>>, vector<20x1xf32>
    %cst_15 = arith.constant dense<0.000000e+00> : vector<2x1xf32>
    %75 = tpu.matmul %73, %74, %cst_15 {dimension_numbers = #tpu.dot_dimension_numbers<[1], [0], [0], [1], [0, 0, 1, 1], [], []>} : vector<2x20xf32>, vector<20x1xf32>, vector<2x1xf32> -> vector<2x1xf32>
    %c0_16 = arith.constant 0 : index
    %c0_17 = arith.constant 0 : index
    %76 = vector.load %arg5[%c0_16, %c0_17] : memref<1x1xf32, #tpu.memory_space<vmem>>, vector<1x1xf32>
    %77 = vector.broadcast %76 : vector<1x1xf32> to vector<2x1xf32>
    %78 = arith.addf %75, %77 : vector<2x1xf32>
    %c0_18 = arith.constant 0 : index
    %c0_19 = arith.constant 0 : index
    %79 = vector.load %arg6[%c0_18, %c0_19] : memref<2x1xf32, #tpu.memory_space<vmem>>, vector<2x1xf32>
    tpu.vector_store %arg6[%c0_18, %c0_19], %78 {strides = array<i32>} : memref<2x1xf32, #tpu.memory_space<vmem>>, vector<2x1xf32>,
    return
  }
}

</mosaic_0001>

<bundles_post_ra>
// kernel: rnn_forward_unrolled.1
= control target key start
LH: loop header
LB: loop body
LE: loop exit
PB: predicated region body
PF: predicated region fallthrough
CT: control target
= control target key end

     0   :  { %v898_v0 = vmov 0   ;;  %v899_v2 = vmov 0.0|0.0   ;;  %vm900_vm0 = vmmov 0   ;;  %v901_v5 = vmov 0.0   ;;  %s1073_s0 = inlined_call_operand.vmem [shape: f32[2,8], index: 0, kind: input, shape index: {}]   ;;  %s1074_s3 = inlined_call_operand.vmem [shape: f32[20,20], index: 3, kind: input, shape index: {}]   ;;  %s1075_s1 = inlined_call_operand.vmem [shape: f32[1,20], index: 1, kind: input, shape index: {}]   ;;  %s1076_s2 = inlined_call_operand.vmem [shape: f32[1,20], index: 2, kind: input, shape index: {}]   ;;  %s1077_s4 = inlined_call_operand.vmem [shape: f32[20,1], index: 4, kind: input, shape index: {}]   ;;  %s1078_s5 = inlined_call_operand.<no memory space> [shape: f32[1,1], index: 5, kind: input, shape index: {}]   ;;  %s1079_s6 = inlined_call_operand.vmem [shape: f32[2,1], index: 6, kind: output, shape index: {}]  }
   0x1   :  { %873 = vset.pattern.permute.xlu0 %v898_v0  ;;  %v947_v1 = vld [vmem:[%s1073_s0] sm:$0x3]  ;;  %838 = vmatprep.subr.bf16.mxu0 %v899_v2  ;;  %v29_v4 = vld [vmem:[%s1074_s3 + $0x8] sm:$0xff]  ;;  %v970_v7 = vld [vmem:[%s1074_s3 + $0x10] sm:$0xf]  ;;  %vm61_vm1 = vcmask 1043456  }
   0x2   :  { %33 = vperm.xlu0 %873, %v947_v1   ;;  %v28_v3 = vld [vmem:[%s1074_s3] sm:$0xff]  ;;  %772 = vmatprep.mubr.msk.f32.mxu0 %vm900_vm0, %v901_v5  ;;  %v902_v8 = vmov 1   ;;  %vm57_vm2 = vcmask 162816   ;;  %v903_v15 = vmov 2   ;;  %v904_v23 = vmov 3   ;;  %v624_v0 = vld [vmem:[%s1077_s4 + $0x8] sm:$0xff] }
   0x3   :  { %v959_v6 = vpack.c.bf16 %v29_v4, %v28_v3  ;;  %841 = vmatprep.subr.bf16.mxu1 %v899_v2  ;;  %781 = vmatprep.mubr.msk.f32.mxu1 %vm900_vm0, %v901_v5  ;;  %v983_v9 = vld [vmem:[%s1075_s1] ss:$0 sm:$0xff]  ;;  %v905_v31 = vmov 4   ;;  %v906_v39 = vmov 5   ;;  %v907_v47 = vmov 6  }
   0x4   :  { %v988_v10 = vld [vmem:[%s1076_s2] ss:$0 sm:$0xff]  ;;  %875 = vset.pattern.permute.xlu1 %v903_v15  ;;  %v908_v55 = vmov 7   ;;  %v11_v3 = vstv %s1078_s5  ;;  %vm709_vm3 = vcmask 1024  }
   0x5   :  { %840 = vmatpush3.bf16.msra.mxu0 %v959_v6  ;;  %843 = vmatpush3.bf16.msra.mxu1 %v959_v6  ;;  %v623_v63 = vld [vmem:[%s1077_s4] sm:$0xff]  ;;  %12 = vst [vmem:[#allocation2] sm:$0x1] %v11_v3 }
   0x6   :  { %770 = vmatprep.subr.mxu0 %v901_v5  ;;  %779 = vmatprep.subr.mxu1 %v901_v5 }
   0x7   :  { %874 = vset.pattern.permute.xlu0 %v902_v8  ;;  %138 = vperm.xlu1 %875, %v947_v1  }
   0x8   :  { %52 = vperm.xlu0 %874, %v947_v1  }
   0x9   :  { %771 = vmatpush3.msk.msra.mxu0 %vm61_vm1, %v970_v7  ;;  %780 = vmatpush3.msk.msra.mxu1 %vm61_vm1, %v970_v7 }
   0xa   :  { %844 = vmatprep.subr.bf16.mxu0 %v899_v2  ;;  %847 = vmatprep.subr.bf16.mxu1 %v899_v2 }
   0xb   :  { %876 = vset.pattern.permute.xlu1 %v904_v23 }
   0xc   :  { %219 = vperm.xlu1 %876, %v947_v1   ;;  %878 = vset.pattern.permute.xlu0 %v906_v39 }
   0xd   :  { %381 = vperm.xlu0 %878, %v947_v1  }
  0x10   :  { %877 = vset.pattern.permute.xlu1 %v905_v31 }
  0x11   :  { %300 = vperm.xlu1 %877, %v947_v1   ;;  %881 = vset.pattern.permute.xlu0 %v908_v55 }
  0x15   :  { %879 = vset.pattern.permute.xlu1 %v907_v47 }
  0x16   :  { %462 = vperm.xlu1 %879, %v947_v1  }
  0x1a   :  { %880 = vset.pattern.permute.xlu1 %v908_v55 }
  0x1b   :  { %543 = vperm.xlu1 %880, %v947_v1   ;;  %v860_v1 = vpack.c.bf16 %v624_v0, %v623_v63 }
  0x81   :  { %v34_v11 = vpop.permute.xlu0 %33 }
  0x82   :  { %v42_v12 = vmul.f32 %v983_v9, %v34_v11 }
  0x84   :  { %v49_v13 = vadd.f32 %v988_v10, %v42_v12 }
  0x86   :  { %882 = vtanh.f32 %v49_v13  ;;  %v139_v24 = vpop.permute.xlu1 %138  ;;  %v731_v13 = vld [vmem:[#allocation2] ss:$0 sm:$0xff] }
  0x87   :  { %v53_v16 = vpop.permute.xlu0 %52  ;;  %v141_v25 = vmul.f32 %v983_v9, %v139_v24 }
  0x88   :  { %v55_v17 = vmul.f32 %v983_v9, %v53_v16 }
  0x89   :  { %v142_v26 = vadd.f32 %v988_v10, %v141_v25 }
  0x8a   :  { %v56_v18 = vadd.f32 %v988_v10, %v55_v17 }
  0x8b   :  { %v220_v32 = vpop.permute.xlu1 %219 }
  0x8c   :  { %v222_v33 = vmul.f32 %v983_v9, %v220_v32  ;;  %v382_v48 = vpop.permute.xlu0 %381 }
  0x8d   :  { %v384_v49 = vmul.f32 %v983_v9, %v382_v48 }
  0x8e   :  { %v223_v34 = vadd.f32 %v988_v10, %v222_v33 }
  0x8f   :  { %v385_v50 = vadd.f32 %v988_v10, %v384_v49 }
  0x90   :  { %v883_v14 = vpop.eup %882  ;;  %v301_v40 = vpop.permute.xlu1 %300 }
  0x91   :  { %773 = vmatmul.mubr.msk.f32.vlgmr.msra.gmra.mrb[0].mxu0 %vm57_vm2, %v883_v14  ;;  %v303_v41 = vmul.f32 %v983_v9, %v301_v40 }
  0x92   :  { %846 = vmatpush3.bf16.msra.mxu0 %v959_v6  ;;  %790 = vmatprep.mubr.msk.f32.mxu0 %vm900_vm0, %v901_v5 }
  0x93   :  { %788 = vmatprep.subr.mxu0 %v901_v5  ;;  %v304_v42 = vadd.f32 %v988_v10, %v303_v41 }
  0x95   :  { %v463_v56 = vpop.permute.xlu1 %462 }
  0x96   :  { %789 = vmatpush3.msk.msra.mxu0 %vm61_vm1, %v970_v7  ;;  %v465_v57 = vmul.f32 %v983_v9, %v463_v56 }
  0x97   :  { %850 = vmatprep.subr.bf16.mxu0 %v899_v2 }
  0x98   :  { %v466_v58 = vadd.f32 %v988_v10, %v465_v57 }
  0x9a   :  { %v544_v4 = vpop.permute.xlu1 %543 }
 0x164   :  { %v131_v19 = vpop.f32.mrb[0].mxu0 }
 0x165   :  { %v135_v20 = vadd.f32 %v131_v19, %v56_v18  ;;  %v774_v21 = vpop.f32.mrb[1].mxu0 }
 0x167   :  { %884 = vtanh.f32 %v135_v20 }
 0x171   :  { %v885_v22 = vpop.eup %884 }
 0x172   :  { %782 = vmatmul.mubr.msk.f32.vlgmr.msra.gmra.mrb[0].mxu1 %vm57_vm2, %v885_v22 }
 0x173   :  { %849 = vmatpush3.bf16.msra.mxu1 %v959_v6  ;;  %799 = vmatprep.mubr.msk.f32.mxu1 %vm900_vm0, %v901_v5 }
 0x174   :  { %797 = vmatprep.subr.mxu1 %v901_v5 }
 0x177   :  { %798 = vmatpush3.msk.msra.mxu1 %vm61_vm1, %v970_v7 }
 0x178   :  { %853 = vmatprep.subr.bf16.mxu1 %v899_v2 }
 0x245   :  { %v212_v27 = vpop.f32.mrb[0].mxu1 }
 0x246   :  { %v216_v28 = vadd.f32 %v212_v27, %v142_v26  ;;  %v783_v29 = vpop.f32.mrb[1].mxu1 }
 0x248   :  { %886 = vtanh.f32 %v216_v28 }
 0x252   :  { %v887_v30 = vpop.eup %886 }
 0x253   :  { %791 = vmatmul.mubr.msk.f32.vlgmr.msra.gmra.mrb[2].mxu0 %vm57_vm2, %v887_v30 }
 0x254   :  { %852 = vmatpush3.bf16.msra.mxu0 %v959_v6  ;;  %808 = vmatprep.mubr.msk.f32.mxu0 %vm900_vm0, %v901_v5 }
 0x255   :  { %806 = vmatprep.subr.mxu0 %v901_v5 }
 0x258   :  { %807 = vmatpush3.msk.msra.mxu0 %vm61_vm1, %v970_v7 }
 0x259   :  { %856 = vmatprep.subr.bf16.mxu0 %v899_v2 }
 0x326   :  { %v293_v35 = vpop.f32.mrb[2].mxu0 }
 0x327   :  { %v297_v36 = vadd.f32 %v293_v35, %v223_v34  ;;  %v792_v37 = vpop.f32.mrb[3].mxu0 }
 0x329   :  { %888 = vtanh.f32 %v297_v36 }
 0x333   :  { %v889_v38 = vpop.eup %888 }
 0x334   :  { %800 = vmatmul.mubr.msk.f32.vlgmr.msra.gmra.mrb[2].mxu1 %vm57_vm2, %v889_v38 }
 0x335   :  { %855 = vmatpush3.bf16.msra.mxu1 %v959_v6  ;;  %817 = vmatprep.mubr.msk.f32.mxu1 %vm900_vm0, %v901_v5 }
 0x336   :  { %815 = vmatprep.subr.mxu1 %v901_v5 }
 0x339   :  { %816 = vmatpush3.msk.msra.mxu1 %vm61_vm1, %v970_v7 }
 0x33a   :  { %859 = vmatprep.subr.bf16.mxu1 %v899_v2  ;;  %v625_v2 = vld [vmem:[%s1077_s4 + $0x10] sm:$0xf] }
 0x407   :  { %v374_v43 = vpop.f32.mrb[2].mxu1 }
 0x408   :  { %v378_v44 = vadd.f32 %v374_v43, %v304_v42  ;;  %v801_v45 = vpop.f32.mrb[3].mxu1 }
 0x40a   :  { %890 = vtanh.f32 %v378_v44 }
 0x414   :  { %v891_v46 = vpop.eup %890 }
 0x415   :  { %809 = vmatmul.mubr.msk.f32.vlgmr.msra.gmra.mrb[4].mxu0 %vm57_vm2, %v891_v46 }
 0x416   :  { %858 = vmatpush3.bf16.msra.mxu0 %v959_v6  ;;  %826 = vmatprep.mubr.msk.f32.mxu0 %vm900_vm0, %v901_v5  ;;  %v546_v6 = vmul.f32 %v983_v9, %v544_v4 }
 0x417   :  { %824 = vmatprep.subr.mxu0 %v901_v5 }
 0x41a   :  { %825 = vmatpush3.msk.msra.mxu0 %vm61_vm1, %v970_v7  ;;  %v547_v7 = vadd.f32 %v988_v10, %v546_v6 }
 0x4e8   :  { %v455_v51 = vpop.f32.mrb[4].mxu0 }
 0x4e9   :  { %v459_v52 = vadd.f32 %v455_v51, %v385_v50  ;;  %v810_v53 = vpop.f32.mrb[5].mxu0 }
 0x4eb   :  { %892 = vtanh.f32 %v459_v52 }
 0x4f5   :  { %v893_v54 = vpop.eup %892 }
 0x4f6   :  { %818 = vmatmul.mubr.msk.f32.vlgmr.msra.gmra.mrb[4].mxu1 %vm57_vm2, %v893_v54 }
 0x4f7   :  { %835 = vmatprep.mubr.msk.f32.mxu1 %vm900_vm0, %v901_v5  ;;  %861 = vmatpush3.bf16.msra.mxu1 %v860_v1 }
 0x4f8   :  { %833 = vmatprep.subr.mxu1 %v901_v5 }
 0x4fb   :  { %834 = vmatpush3.msk.msra.mxu1 %vm61_vm1, %v625_v2 }
 0x5c9   :  { %v536_v59 = vpop.f32.mrb[4].mxu1 }
 0x5ca   :  { %v540_v60 = vadd.f32 %v536_v59, %v466_v58  ;;  %v819_v61 = vpop.f32.mrb[5].mxu1 }
 0x5cc   :  { %894 = vtanh.f32 %v540_v60 }
 0x5d6   :  { %v895_v62 = vpop.eup %894 }
 0x5d7   :  { %827 = vmatmul.mubr.msk.f32.vlgmr.msra.gmra.mrb[6].mxu0 %vm57_vm2, %v895_v62 }
 0x6aa   :  { %v617_v8 = vpop.f32.mrb[6].mxu0 }
 0x6ab   :  { %v621_v11 = vadd.f32 %v617_v8, %v547_v7  ;;  %v828_v12 = vpop.f32.mrb[7].mxu0 }
 0x6ad   :  { %896 = vtanh.f32 %v621_v11 }
 0x6b7   :  { %v897_v5 = vpop.eup %896 }
 0x6b8   :  { %836 = vmatmul.mubr.msk.f32.vlgmr.msra.gmra.mrb[6].mxu1 %vm57_vm2, %v897_v5 }
 0x78b   :  { %v705_v14 = vpop.f32.mrb[6].mxu1 }
 0x78c   :  { %v706_v15 = vadd.f32 %v731_v13, %v705_v14  ;;  %v837_v16 = vpop.f32.mrb[7].mxu1 }
 0x78e   :  { %710 = vst.msk [vmem:[%s1079_s6] sm:$0x3] %vm709_vm3, %v706_v15 }

</bundles_post_ra>
